<compile_context>
chip_gen: v5e
topology: v5e:2x2
jax: 0.10.0
libtpu: 0.0.40
codegen_flags: <defaults>
</compile_context>

<pallas_src>
import functools

import jax
import jax.numpy as jnp
from jax.experimental import pallas as pl
from jax.experimental.pallas import tpu as pltpu

_HIGHEST = jax.lax.Precision.HIGHEST   # reference only; kernels use DEFAULT


def _round_up(n, m):
    return ((n + m - 1) // m) * m


def _round_down_128(n):
    return (n // 128) * 128


def _pick_lane_tile(n, per_lane_bytes, *, budget_bytes=24 << 20, cap=4096,
                    min_steps=8):
    """128-multiple lane tile: as large as the VMEM budget allows, but leaving
    >= min_steps grid steps when the problem is big enough (v7x occupancy)."""
    n128 = _round_up(max(int(n), 1), 128)
    t_budget = max(128, _round_down_128(budget_bytes // max(per_lane_bytes, 1)))
    t_steps = max(128, _round_down_128(n128 // min_steps))
    return min(t_budget, cap, n128, t_steps)


# -----------------------------------------------------------------------------
# Kernel 1: gdep mix-hop propagation steps with the adjacency resident in VMEM.
#   a_scaled : (V, V) f32   = (1-alpha) * row_normalize(adj + I)
#   x_t      : (V, N) f32   with N = C*B*L (node dim on sublanes, rest on lanes)
#   hops     : (gdep+1, V, N) bf16, hop 0 is x itself.
# -----------------------------------------------------------------------------
def _propagate(a_scaled, x_t, *, gdep, alpha, out_dtype=jnp.bfloat16):
    V, n = x_t.shape
    # double-buffered x (f32) + hops (bf16) blocks + in-kernel f32 temporaries
    per_lane = V * (24 + 4 * (gdep + 1))
    budget = max((24 << 20) - 8 * V * V, 1 << 20)
    tn = _pick_lane_tile(n, per_lane, budget_bytes=budget, cap=4096)
    n_pad = _round_up(n, tn)
    if n_pad != n:
        x_t = jnp.pad(x_t, ((0, 0), (0, n_pad - n)))

    def kernel(a_ref, x_ref, hops_ref):
        a = a_ref[...]                                  # (V, V), pre-normalized
        x = x_ref[...]                                  # (V, tn) f32
        ax = alpha * x                                  # hoisted out of the loop
        hops_ref[0, :, :] = x.astype(hops_ref.dtype)
        h = x
        for k in range(gdep):                           # gdep is static & small
            h = ax + jnp.dot(a, h, preferred_element_type=jnp.float32)
            hops_ref[k + 1, :, :] = h.astype(hops_ref.dtype)

    hops = pl.pallas_call(
        kernel,
        out_shape=jax.ShapeDtypeStruct((gdep + 1, V, n_pad), out_dtype),
        grid=(n_pad // tn,),
        in_specs=[
            pl.BlockSpec((V, V), lambda j: (0, 0)),      # adjacency: resident
            pl.BlockSpec((V, tn), lambda j: (0, j)),
        ],
        out_specs=pl.BlockSpec((gdep + 1, V, tn), lambda j: (0, 0, j)),
        compiler_params=pltpu.CompilerParams(
            dimension_semantics=("parallel",),
            vmem_limit_bytes=32 << 20),
    )(a_scaled, x_t)
    return hops[:, :, :n] if n_pad != n else hops


# -----------------------------------------------------------------------------
# Kernel 2: 1x1-conv MLP as a lane-dense matmul.
#   weight : (c_out, KC) bf16   h_cat : (KC, M) bf16   bias : (c_out, 1) f32
#   out    : (c_out, M) f32
# -----------------------------------------------------------------------------
def _mlp(weight, h_cat, bias):
    c_out, kc = weight.shape
    _, m = h_cat.shape
    per_lane = 4 * kc + 16 * c_out                       # bf16 in + f32 out blocks
    tn = _pick_lane_tile(m, per_lane, cap=8192)
    m_pad = _round_up(m, tn)
    if m_pad != m:
        h_cat = jnp.pad(h_cat, ((0, 0), (0, m_pad - m)))

    def kernel(w_ref, h_ref, b_ref, o_ref):
        acc = jnp.dot(w_ref[...], h_ref[...], preferred_element_type=jnp.float32)
        o_ref[...] = (acc + b_ref[...]).astype(o_ref.dtype)

    y = pl.pallas_call(
        kernel,
        out_shape=jax.ShapeDtypeStruct((c_out, m_pad), jnp.float32),
        grid=(m_pad // tn,),
        in_specs=[
            pl.BlockSpec((c_out, kc), lambda j: (0, 0)),
            pl.BlockSpec((kc, tn), lambda j: (0, j)),
            pl.BlockSpec((c_out, 1), lambda j: (0, 0)),
        ],
        out_specs=pl.BlockSpec((c_out, tn), lambda j: (0, j)),
        compiler_params=pltpu.CompilerParams(
            dimension_semantics=("parallel",),
            vmem_limit_bytes=32 << 20),
    )(weight, h_cat, bias)
    return y[:, :m] if m_pad != m else y


@functools.partial(jax.jit, static_argnames=("gdep", "alpha"))
def mixprop_forward(x, adj, weight, bias, *, gdep, alpha):
    """Pallas port of mixprop.forward.  x: (B, C, V, L), adj: (V, V)."""
    B, C, V, L = x.shape
    c_out, kc = weight.shape
    assert kc == (gdep + 1) * C and adj.shape == (V, V)

    # Adjacency normalization hoisted to the wrapper (tiny (V,V) op), with
    # (1 - alpha) folded in so the in-kernel hop is h = alpha*x + a_s @ h.
    a = adj.astype(jnp.float32) + jnp.eye(V, dtype=jnp.float32)
    a_scaled = (1.0 - alpha) * a / jnp.sum(a, axis=1, keepdims=True)

    # Node dim -> sublanes, (channel, batch, seq) -> lanes: (V, C*B*L).
    x_t = jnp.transpose(x, (2, 1, 0, 3)).reshape(V, C * B * L)
    x_t = x_t.astype(jnp.float32)
    hops = _propagate(a_scaled, x_t, gdep=gdep, alpha=alpha)   # (gdep+1, V, C*B*L) bf16

    # Layout plumbing for the 1x1 conv: rows = k*C + c, lanes = (v, b, l).
    h_cat = (hops.reshape(gdep + 1, V, C, B, L)
                 .transpose(0, 2, 1, 3, 4)
                 .reshape(kc, V * B * L))
    y = _mlp(weight.astype(jnp.bfloat16), h_cat,
             bias.astype(jnp.float32).reshape(c_out, 1))        # (c_out, V*B*L) f32
    return y.reshape(c_out, V, B, L).transpose(2, 0, 1, 3)      # (B, c_out, V, L)


class MixProp:
    """JAX/Pallas port of the PyTorch `mixprop` module."""

    def __init__(self, c_in, c_out, gdep, dropout, alpha, key=None):
        self.c_in, self.c_out = c_in, c_out
        self.gdep, self.alpha = gdep, float(alpha)
        self.dropout = dropout  # kept for API parity; never applied in forward
        if key is None:
            key = jax.random.PRNGKey(0)
        kw, kb = jax.random.split(key)
        fan_in = (gdep + 1) * c_in
        bound = 1.0 / (fan_in ** 0.5)      # Conv2d(1x1) default init scale
        self.weight = jax.random.uniform(kw, (c_out, fan_in), jnp.float32,
                                         minval=-bound, maxval=bound)
        self.bias = jax.random.uniform(kb, (c_out,), jnp.float32,
                                       minval=-bound, maxval=bound)

    def __call__(self, x, adj):
        return mixprop_forward(x, adj, self.weight, self.bias,
                               gdep=self.gdep, alpha=self.alpha)


def mixprop_reference(x, adj, weight, bias, gdep, alpha):
    """Pure-JAX replica of the PyTorch forward (HIGHEST precision, f32)."""
    V = adj.shape[0]
    adj = adj + jnp.eye(V, dtype=adj.dtype)
    d = adj.sum(axis=1)
    a = adj / d[:, None]
    h = x
    outs = [h]
    for _ in range(gdep):
        h = alpha * x + (1.0 - alpha) * jnp.einsum(
            "ncwl,vw->ncvl", h, a, precision=_HIGHEST)
        outs.append(h)
    ho = jnp.concatenate(outs, axis=1)                 # (B, (gdep+1)*C, V, L)
    y = jnp.einsum("bivl,oi->bovl", ho, weight, precision=_HIGHEST)
    return y + bias[None, :, None, None]


if __name__ == "__main__":
    B, C_IN, V, L = 2, 4, 16, 8
    C_OUT, GDEP, ALPHA, DROPOUT = 8, 2, 0.05, 0.3

    root = jax.random.PRNGKey(0)
    kx, kadj, kparam = jax.random.split(root, 3)
    x = jax.random.normal(kx, (B, C_IN, V, L), dtype=jnp.float32)
    adj = jax.random.uniform(kadj, (V, V), dtype=jnp.float32)  # non-neg adjacency

    module = MixProp(C_IN, C_OUT, GDEP, DROPOUT, ALPHA, key=kparam)
    out = module(x, adj)
    out = jax.block_until_ready(out)

    ref = mixprop_reference(x, adj, module.weight, module.bias, GDEP, ALPHA)
    assert out.shape == (B, C_OUT, V, L)
    # Kernels run the MXU at DEFAULT (bf16-input) precision and store hops in
    # bf16, so compare against the f32/HIGHEST reference at ~bf16 tolerance.
    max_err = float(jnp.max(jnp.abs(out - ref)))
    assert jnp.allclose(out, ref, rtol=2e-2, atol=2e-2), max_err

    print("KERNEL_OK")
</pallas_src>

<mosaic_0001>
module attributes {stable_mosaic.version = 11 : i64} {
  func.func @kernel(%arg0: i32, %arg1: memref<8x12xbf16, #tpu.memory_space<vmem>>, %arg2: memref<12x128xbf16, #tpu.memory_space<vmem>>, %arg3: memref<8x1xf32, #tpu.memory_space<vmem>>, %arg4: memref<8x128xf32, #tpu.memory_space<vmem>>) attributes {dimension_semantics = [#tpu.dimension_semantics<parallel>], iteration_bounds = array<i64: 2>, scalar_prefetch = 0 : i64, scratch_operands = 0 : i64, tpu.core_type = #tpu.core_type<tc>, window_params = [{pipeline_mode = #tpu.pipeline_mode<synchronous>, transform_indices = @transform_0, window_bounds = array<i64: 8, 12>}, {transform_indices = @transform_1, window_bounds = array<i64: 12, 128>}, {pipeline_mode = #tpu.pipeline_mode<synchronous>, transform_indices = @transform_2, window_bounds = array<i64: 8, 1>}, {transform_indices = @transform_3, window_bounds = array<i64: 8, 128>}]} {
    %c0 = arith.constant 0 : index
    %c0_0 = arith.constant 0 : index
    %0 = vector.load %arg1[%c0, %c0_0] : memref<8x12xbf16, #tpu.memory_space<vmem>>, vector<8x12xbf16>
    %c0_1 = arith.constant 0 : index
    %c0_2 = arith.constant 0 : index
    %1 = vector.load %arg2[%c0_1, %c0_2] : memref<12x128xbf16, #tpu.memory_space<vmem>>, vector<12x128xbf16>
    %cst = arith.constant dense<0.000000e+00> : vector<8x128xf32>
    %2 = tpu.matmul %0, %1, %cst {dimension_numbers = #tpu.dot_dimension_numbers<[1], [0], [0], [1], [0, 0, 1, 1], [], []>} : vector<8x12xbf16>, vector<12x128xbf16>, vector<8x128xf32> -> vector<8x128xf32>
    %c0_3 = arith.constant 0 : index
    %c0_4 = arith.constant 0 : index
    %3 = vector.load %arg3[%c0_3, %c0_4] : memref<8x1xf32, #tpu.memory_space<vmem>>, vector<8x1xf32>
    %4 = vector.broadcast %3 : vector<8x1xf32> to vector<8x128xf32>
    %5 = arith.addf %2, %4 : vector<8x128xf32>
    %c0_5 = arith.constant 0 : index
    %c0_6 = arith.constant 0 : index
    %6 = vector.load %arg4[%c0_5, %c0_6] : memref<8x128xf32, #tpu.memory_space<vmem>>, vector<8x128xf32>
    tpu.vector_store %arg4[%c0_5, %c0_6], %5 {strides = array<i32>} : memref<8x128xf32, #tpu.memory_space<vmem>>, vector<8x128xf32>,
    return
  }
  func.func @transform_0(%arg0: i32) -> (i32, i32) {
    %c0_i32 = arith.constant 0 : i32
    %c0_i32_0 = arith.constant 0 : i32
    %c0_i32_1 = arith.constant 0 : i32
    return %c0_i32, %c0_i32_0 : i32, i32
  }
  func.func @transform_1(%arg0: i32) -> (i32, i32) {
    %c0_i32 = arith.constant 0 : i32
    %c0_i32_0 = arith.constant 0 : i32
    return %c0_i32, %arg0 : i32, i32
  }
  func.func @transform_2(%arg0: i32) -> (i32, i32) {
    %c0_i32 = arith.constant 0 : i32
    %c0_i32_0 = arith.constant 0 : i32
    %c0_i32_1 = arith.constant 0 : i32
    return %c0_i32, %c0_i32_0 : i32, i32
  }
  func.func @transform_3(%arg0: i32) -> (i32, i32) {
    %c0_i32 = arith.constant 0 : i32
    %c0_i32_0 = arith.constant 0 : i32
    return %c0_i32, %arg0 : i32, i32
  }
}

module attributes {stable_mosaic.version = 11 : i64} {
  func.func @kernel(%arg0: i32, %arg1: memref<16x16xf32, #tpu.memory_space<vmem>>, %arg2: memref<16x128xf32, #tpu.memory_space<vmem>>, %arg3: memref<3x16x128xbf16, #tpu.memory_space<vmem>>) attributes {dimension_semantics = [#tpu.dimension_semantics<parallel>], iteration_bounds = array<i64: 1>, scalar_prefetch = 0 : i64, scratch_operands = 0 : i64, tpu.core_type = #tpu.core_type<tc>, window_params = [{pipeline_mode = #tpu.pipeline_mode<synchronous>, transform_indices = @transform_0, window_bounds = array<i64: 16, 16>}, {transform_indices = @transform_1, window_bounds = array<i64: 16, 128>}, {transform_indices = @transform_2, window_bounds = array<i64: 3, 16, 128>}]} {
    %c0 = arith.constant 0 : index
    %c0_0 = arith.constant 0 : index
    %0 = vector.load %arg1[%c0, %c0_0] : memref<16x16xf32, #tpu.memory_space<vmem>>, vector<16x16xf32>
    %c0_1 = arith.constant 0 : index
    %c0_2 = arith.constant 0 : index
    %1 = vector.load %arg2[%c0_1, %c0_2] : memref<16x128xf32, #tpu.memory_space<vmem>>, vector<16x128xf32>
    %cst = arith.constant 5.000000e-02 : f32
    %2 = vector.broadcast %cst : f32 to vector<16x128xf32>
    %3 = arith.mulf %2, %1 : vector<16x128xf32>
    %4 = arith.truncf %1 : vector<16x128xf32> to vector<16x128xbf16>
    %c0_3 = arith.constant 0 : index
    %c0_4 = arith.constant 0 : index
    %c0_5 = arith.constant 0 : index
    %5 = vector.load %arg3[%c0_3, %c0_4, %c0_5] : memref<3x16x128xbf16, #tpu.memory_space<vmem>>, vector<1x16x128xbf16>
    %6 = vector.shape_cast %5 : vector<1x16x128xbf16> to vector<16x128xbf16>
    %7 = vector.shape_cast %4 : vector<16x128xbf16> to vector<1x16x128xbf16>
    tpu.vector_store %arg3[%c0_3, %c0_4, %c0_5], %7 {strides = array<i32>} : memref<3x16x128xbf16, #tpu.memory_space<vmem>>, vector<1x16x128xbf16>,
    %cst_6 = arith.constant dense<0.000000e+00> : vector<16x128xf32>
    %8 = tpu.matmul %0, %1, %cst_6 {dimension_numbers = #tpu.dot_dimension_numbers<[1], [0], [0], [1], [0, 0, 1, 1], [], []>} : vector<16x16xf32>, vector<16x128xf32>, vector<16x128xf32> -> vector<16x128xf32>
    %9 = arith.addf %3, %8 : vector<16x128xf32>
    %10 = arith.truncf %9 : vector<16x128xf32> to vector<16x128xbf16>
    %c1 = arith.constant 1 : index
    %c0_7 = arith.constant 0 : index
    %c0_8 = arith.constant 0 : index
    %11 = vector.load %arg3[%c1, %c0_7, %c0_8] : memref<3x16x128xbf16, #tpu.memory_space<vmem>>, vector<1x16x128xbf16>
    %12 = vector.shape_cast %11 : vector<1x16x128xbf16> to vector<16x128xbf16>
    %13 = vector.shape_cast %10 : vector<16x128xbf16> to vector<1x16x128xbf16>
    tpu.vector_store %arg3[%c1, %c0_7, %c0_8], %13 {strides = array<i32>} : memref<3x16x128xbf16, #tpu.memory_space<vmem>>, vector<1x16x128xbf16>,
    %cst_9 = arith.constant dense<0.000000e+00> : vector<16x128xf32>
    %14 = tpu.matmul %0, %9, %cst_9 {dimension_numbers = #tpu.dot_dimension_numbers<[1], [0], [0], [1], [0, 0, 1, 1], [], []>} : vector<16x16xf32>, vector<16x128xf32>, vector<16x128xf32> -> vector<16x128xf32>
    %15 = arith.addf %3, %14 : vector<16x128xf32>
    %16 = arith.truncf %15 : vector<16x128xf32> to vector<16x128xbf16>
    %c2 = arith.constant 2 : index
    %c0_10 = arith.constant 0 : index
    %c0_11 = arith.constant 0 : index
    %17 = vector.load %arg3[%c2, %c0_10, %c0_11] : memref<3x16x128xbf16, #tpu.memory_space<vmem>>, vector<1x16x128xbf16>
    %18 = vector.shape_cast %17 : vector<1x16x128xbf16> to vector<16x128xbf16>
    %19 = vector.shape_cast %16 : vector<16x128xbf16> to vector<1x16x128xbf16>
    tpu.vector_store %arg3[%c2, %c0_10, %c0_11], %19 {strides = array<i32>} : memref<3x16x128xbf16, #tpu.memory_space<vmem>>, vector<1x16x128xbf16>,
    return
  }
  func.func @transform_0(%arg0: i32) -> (i32, i32) {
    %c0_i32 = arith.constant 0 : i32
    %c0_i32_0 = arith.constant 0 : i32
    %c0_i32_1 = arith.constant 0 : i32
    return %c0_i32, %c0_i32_0 : i32, i32
  }
  func.func @transform_1(%arg0: i32) -> (i32, i32) {
    %c0_i32 = arith.constant 0 : i32
    %c0_i32_0 = arith.constant 0 : i32
    return %c0_i32, %arg0 : i32, i32
  }
  func.func @transform_2(%arg0: i32) -> (i32, i32, i32) {
    %c0_i32 = arith.constant 0 : i32
    %c0_i32_0 = arith.constant 0 : i32
    %c0_i32_1 = arith.constant 0 : i32
    return %c0_i32, %c0_i32_0, %arg0 : i32, i32, i32
  }
}

</mosaic_0001>

<bundles_post_ra>
// kernel: mixprop_forward.3
= control target key start
LH: loop header
LB: loop body
LE: loop exit
PB: predicated region body
PF: predicated region fallthrough
CT: control target
= control target key end

     0   :  { %s400_s12 = smov 0   ;;  %s402_s13 = smov 0   ;;  %s460_s0 = inlined_call_operand.vmem [shape: bf16[8,12], index: 0, kind: input, shape index: {}]   ;;  %s461_s1 = inlined_call_operand.vmem [shape: bf16[12,256], index: 1, kind: input, shape index: {}]   ;;  %s462_s2 = inlined_call_operand.vmem [shape: f32[8,1], index: 2, kind: input, shape index: {}]   ;;  %s463_s3 = inlined_call_operand.vmem [shape: f32[8,256], index: 3, kind: output, shape index: {}]  }
   0x1   :  { %s404_s14 = smov 0  }
   0x2 LB: > { %s312_s15 = sadd.s32 4294967295, %s377_s14   ;;  %s417_s16 = sadd.s32 1, %s377_s14   ;;  %s377_s14 = sphi %s404_s14, %s466_s14   ;;  %s373_s13 = sphi %s402_s13, %s465_s13   ;;  %s369_s12 = sphi %s400_s12, %s464_s12  }
   0x3   : > { %s38_s17 = ssub.s32 %s377_s14, %s417_s16  ;;  %s41_s18 = sadd.s32 1, %s373_s13 }
   0x4   : > { %p39_p0 = scmp.eq.s32.totalorder %s38_s17, 0  ;;  %p48_p1 = scmp.ne.s32.totalorder %s373_s13, %s369_s12 }
   0x5   : > { %p49_p2 = scmp.eq.s32.totalorder %s377_s14, 0  ;;  %p315_p4 = scmp.ge.s32.totalorder %s377_s14, 2 }
   0x6   : > { %s426_s19 = scalar_select %p39_p0, %s373_s13, %s41_s18  }
   0x7   : > { %p50_p3 = por %p49_p2, %p48_p1  ;;  %127 = sbr.rel (%p315_p4) target bundleno = 18 (0x12), region = 24 }
   0xc   : > { %130 = sbr.rel (!%p50_p3) target bundleno = 18 (0x12), region = 28  ;;  %s132_s20 = sand.u32 (%p50_p3), 1, %s373_s13  }
   0xd   : > { %s317_s21 = sshll.u32 (%p50_p3), %s377_s14, 2  ;;  %s316_s22 = sshll.u32 (%p50_p3), %s132_s20, 3 }
   0xe   : > { %s136_s25 = scalar_lea.vmem (%p50_p3), %s461_s1, %s317_s21  ;;  %s134_s26 = scalar_lea.vmem (%p50_p3), [#allocation2], %s316_s22 }
   0xf   : > { %v153_v0 = vld [vmem:[%s136_s25] sm:$0xf] (%p50_p3)  ;;  %v155_v1 = vld [vmem:[%s136_s25 + $0x8] sm:$0xf] (%p50_p3) }
  0x10   : > { %154 = vst [vmem:[%s134_s26] sm:$0xf] (%p50_p3), %v153_v0 }
  0x11   : > { %156 = vst [vmem:[%s134_s26 + $0x4] sm:$0xf] %v155_v1 }
  0x12 PF: > { %p318_p5 = scmp.ge.s32.totalorder %s377_s14, 1  ;;  %p183_p6 = scmp.lt.s32.totalorder %s377_s14, 3 }
  0x14   : > { %p184_p7 = pnand %p318_p5, %p183_p6 }
  0x15   : > { %s190_s27 = sand.u32 (!%p184_p7), 1, %s369_s12   ;;  %p212_p8 = scmp.lt.s32.totalorder (!%p184_p7), %s312_s15, 1 }
  0x16   : > { %187 = sbr.rel (%p184_p7) target bundleno = 169 (0xa9), region = 69  ;;  %s319_s28 = sshll.u32 (!%p184_p7), %s190_s27, 3 }
  0x17   : > { %s192_s4 = scalar_lea.vmem (!%p184_p7), [#allocation2], %s319_s28 }
  0x1b   : > { %v379_v2 = vmov 0   ;;  %v220_v3 = vld [vmem:[%s462_s2] sm:$0xff]  ;;  %vm235_vm0 = vcmask 1045504   ;;  %vm231_vm1 = vcmask 97280   ;;  %s468_s15 = smov (!%p212_p8, %s312_s15), 1 }
  0x1c   : > { %354 = vset.pattern.permute.xlu0 %v379_v2  ;;  %v323_v4 = vld [vmem:[%s192_s4] sm:$0xf]  ;;  %v328_v5 = vld [vmem:[%s192_s4] sm:$0x30]  ;;  %s320_s7 = sshll.u32 %s468_s15, 3 }
  0x1d   : > { %223 = vperm.xlu0 %354, %v220_v3   ;;  %v324_v6 = vor.u32 %v328_v5, %v323_v4  ;;  %v217_v8 = vld [vmem:[%s460_s0] sm:$0xf]  ;;  %s215_s10 = scalar_lea.vmem %s463_s3, %s320_s7 }
  0x1f   : > { %v237_v7 = vsel %vm235_vm0, %v324_v6, 0 }
  0x20   : > { %246 = vmatpush.bf16.msra.mxu0 %v237_v7 }
  0x23   : > { %325 = vmatmul.msk.bf16.vlgmr.msra.gmra.mxu0 %vm231_vm1, %v217_v8 }
  0x8f   : > { %v224_v9 = vpop.permute.xlu0 %223 }
  0xa0   : > { %v248_v10 = vpop.f32.mrf.mxu0 }
  0xa1   : > { %v249_v11 = vadd.f32 %v248_v10, %v224_v9 }
  0xa3   : > { %252 = vst [vmem:[%s215_s10] sm:$0xff] %v249_v11 }
  0xa8   : > { %v250_v12 = vpop.f32.mrf.mxu0 }
  0xa9 PF: > { %p10_p9 = scmp.ge.s32.totalorder %s417_s16, 4   ;;  %s464_s12 = smov %s373_s13 }
  0xaa   : > { %s465_s13 = smov %s426_s19  ;;  %s466_s14 = smov %s417_s16 }
  0xab   :  { %12 = sbr.rel (!%p10_p9) target bundleno = 2 (0x2), region = 108 }

// kernel: mixprop_forward.2
= control target key start
LH: loop header
LB: loop body
LE: loop exit
PB: predicated region body
PF: predicated region fallthrough
CT: control target
= control target key end

     0   :  { %vm21_vm0 = vcmask 130048   ;;  %s161_s1 = inlined_call_operand.vmem [shape: f32[16,128], index: 1, kind: input, shape index: {}]   ;;  %s162_s0 = inlined_call_operand.vmem [shape: f32[16,16], index: 0, kind: input, shape index: {}]   ;;  %s163_s2 = inlined_call_operand.vmem [shape: bf16[3,16,128], index: 2, kind: output, shape index: {}]  }
   0x1   :  { %v14_v0 = vld [vmem:[%s161_s1 + $0x8] sm:$0xff]  ;;  %v13_v1 = vld [vmem:[%s161_s1] sm:$0xff] }
   0x2   :  { %117 = vmatpush.msra.mxu2 %v14_v0  ;;  %v12_v2 = vld [vmem:[%s162_s0 + $0x8] sm:$0xff]  ;;  %42 = vmatpush.msra.mxu0 %v14_v0  ;;  %v11_v3 = vld [vmem:[%s162_s0] sm:$0xff]  ;;  %v103_v4 = vpack.c.bf16 %v14_v0, %v13_v1  ;;  %v15_v5 = vmul.f32 0.05, %v13_v1  ;;  %v16_v7 = vmul.f32 0.05, %v14_v0 }
   0x4   :  { %118 = vmatpush.msra.mxu2 %v13_v1  ;;  %43 = vmatpush.msra.mxu0 %v13_v1  ;;  %104 = vst [vmem:[%s163_s2] sm:$0xff] %v103_v4  }
   0x5   :  { %93 = vmatmul.msk.f32.vlgmr.msra.gmra.mxu2 %vm21_vm0, %v12_v2  ;;  %92 = vmatmul.msk.f32.vlgmr.msra.gmra.mxu0 %vm21_vm0, %v11_v3 }
  0x82   :  { %v45_v6 = vpop.f32.mrf.mxu0 }
  0x83   :  { %v51_v8 = vadd.f32 %v45_v6, %v15_v5 }
  0x88   :  { %v48_v9 = vpop.f32.mrf.mxu2 }
  0x89   :  { %v52_v10 = vadd.f32 %v48_v9, %v16_v7 }
  0x8b   :  { %v108_v11 = vpack.c.bf16 %v52_v10, %v51_v8  ;;  %72 = vmatpush.msra.mxu1 %v52_v10  ;;  %119 = vmatpush.msra.mxu3 %v52_v10 }
  0x8d   :  { %73 = vmatpush.msra.mxu1 %v51_v8  ;;  %120 = vmatpush.msra.mxu3 %v51_v8  ;;  %115 = vst [vmem:[%s163_s2 + $0x8] sm:$0xff] %v108_v11  }
  0x8e   :  { %97 = vmatmul.msk.f32.vlgmr.msra.gmra.mxu3 %vm21_vm0, %v12_v2  ;;  %96 = vmatmul.msk.f32.vlgmr.msra.gmra.mxu1 %vm21_vm0, %v11_v3 }
 0x10b   :  { %v75_v12 = vpop.f32.mrf.mxu1 }
 0x10c   :  { %v81_v13 = vadd.f32 %v75_v12, %v15_v5 }
 0x111   :  { %v78_v14 = vpop.f32.mrf.mxu3 }
 0x112   :  { %v82_v15 = vadd.f32 %v78_v14, %v16_v7 }
 0x114   :  { %v113_v16 = vpack.c.bf16 %v82_v15, %v81_v13 }
 0x116   :  { %116 = vst [vmem:[%s163_s2 + $0x10] sm:$0xff] %v113_v16  }

</bundles_post_ra>
